<compile_context>
chip_gen: v6e
topology: v6e:2x2x1
jax: 0.10.0
libtpu: 0.0.40
codegen_flags: <defaults>
</compile_context>

<pallas_src>
import functools
import math

import jax
import jax.numpy as jnp
from jax.experimental import pallas as pl
from jax.experimental.pallas import tpu as pltpu

LN_EPS = 1e-5


def _round_up(n, m):
    return ((n + m - 1) // m) * m


def _embed_ln_kernel(p_ref, w_ref, c_ref, o_ref, *, e_true):
    """(tm, K) @ (K, E_pad) + bias -> LayerNorm over true E -> store (tm, E)."""
    # Conv-as-matmul on the MXU; f32 accumulation even for bf16 inputs.
    y = jnp.dot(p_ref[...], w_ref[...], preferred_element_type=jnp.float32)

    bias = c_ref[0:1, :]
    gamma = c_ref[1:2, :]
    beta = c_ref[2:3, :]
    mask = c_ref[3:4, :]          # 1.0 on the true E lanes, 0.0 on pad lanes

    y = y + bias

    # LayerNorm in f32 over the true embedding width; the mask row makes the
    # statistics independent of whatever sits in the padded lanes.
    inv_e = 1.0 / float(e_true)
    mu = jnp.sum(y * mask, axis=-1, keepdims=True) * inv_e
    d = y - mu
    dm = d * mask
    var = jnp.sum(dm * dm, axis=-1, keepdims=True) * inv_e
    yn = d * jax.lax.rsqrt(var + LN_EPS)      # rsqrt -> EUP slot (free vs VPU/MXU)
    out = yn * gamma + beta

    e_store = o_ref.shape[-1]                 # true E; drops pad lanes at the store
    o_ref[...] = out[:, :e_store].astype(o_ref.dtype)


def _im2col_nhwc(x_nhwc, kh, kw, stride, pad_h, pad_w):
    """Zero-pad + gather overlapping taps.  Returns ((B, Ho*Wo, kh*kw*C), Ho, Wo).

    Taps are stacked as a new axis directly in front of C, so the large patch
    tensor is materialized once, already in its final (tap-major, C-minor)
    layout -- no additional full-size transpose pass.
    """
    B, H, W, C = x_nhwc.shape
    xp = jnp.pad(x_nhwc, ((0, 0), (pad_h, pad_h), (pad_w, pad_w), (0, 0)))
    Hp, Wp = H + 2 * pad_h, W + 2 * pad_w
    Ho = (Hp - kh) // stride + 1
    Wo = (Wp - kw) // stride + 1
    taps = []
    for i in range(kh):
        for j in range(kw):
            taps.append(xp[:, i:i + stride * Ho:stride, j:j + stride * Wo:stride, :])
    col = jnp.stack(taps, axis=3)                         # (B, Ho, Wo, kh*kw, C)
    return col.reshape(B, Ho * Wo, kh * kw * C), Ho, Wo


def overlap_patch_embed(x, conv_w, conv_b, ln_w, ln_b, *, stride,
                        row_tile=512, compute_dtype=jnp.bfloat16, out_dtype=None):
    """OverlapPatchEmbed forward.

    x: (B, C, H, W).  conv_w: (E, C, kh, kw).  Returns ((B, L, E), Ho, Wo).

    NOTE (deliberate precision trade): activations / weights are cast to
    `compute_dtype` (bf16 by default) for the im2col + matmul, and the result
    is emitted in `out_dtype` (defaults to `compute_dtype`); MXU accumulation
    and LayerNorm statistics stay in f32.  Pass compute_dtype=jnp.float32 for
    a full-precision path.
    """
    if out_dtype is None:
        out_dtype = compute_dtype
    E, C, kh, kw = conv_w.shape
    pad_h, pad_w = kh // 2, kw // 2

    # TODO(synk): fuse the im2col into the kernel (tap accumulation with halo
    # reuse in VMEM, reading the padded NHWC input directly) to eliminate the
    # ~2-3x patch-matrix HBM stream entirely; kept in XLA here (transpose-free,
    # compute-dtype) for lowering robustness.
    x_nhwc = x.astype(compute_dtype).transpose(0, 2, 3, 1)
    patches, Ho, Wo = _im2col_nhwc(x_nhwc, kh, kw, stride, pad_h, pad_w)
    B, L, K = patches.shape
    N = B * L
    patches2d = patches.reshape(N, K)

    # Lane-dense matmul columns (multiple of 128); the store keeps only true E.
    E_pad = _round_up(E, 128)

    # Weight laid out to match the (kh, kw, C)-minor patch feature order.
    w_mat = conv_w.transpose(2, 3, 1, 0).reshape(K, E).astype(compute_dtype)
    if E_pad != E:
        w_mat = jnp.pad(w_mat, ((0, 0), (0, E_pad - E)))

    # Conv bias / LN gamma / LN beta / pad-lane mask as one (4, E_pad) operand.
    def _pad_e(v):
        v = v.astype(jnp.float32)
        return jnp.pad(v, (0, E_pad - E)) if E_pad != E else v
    mask = (jnp.arange(E_pad) < E).astype(jnp.float32)
    consts = jnp.stack([_pad_e(conv_b), _pad_e(ln_w), _pad_e(ln_b), mask], axis=0)

    # Row tiles: large pipelined slabs; no row padding -- cdiv grid + clipped
    # edge-block stores handle N % tm != 0 (LN is strictly row-wise, so garbage
    # edge rows never contaminate valid rows).
    tm = min(row_tile, _round_up(N, 8))
    grid = (pl.cdiv(N, tm),)

    in_bytes = jnp.dtype(compute_dtype).itemsize
    out_bytes = jnp.dtype(out_dtype).itemsize
    vmem_needed = (2 * tm * K * in_bytes          # double-buffered patch tiles
                   + K * E_pad * in_bytes         # resident projection weight
                   + 2 * 4 * E_pad * 4            # constants
                   + 2 * tm * E * out_bytes       # double-buffered output tiles
                   + tm * E_pad * 4)              # f32 matmul / LN intermediate
    phys_vmem = 64 << 20                          # conservative default (v7x per-core)
    try:
        phys_vmem = int(getattr(pltpu.get_tpu_info(), "vmem_capacity_bytes", phys_vmem))
    except Exception:
        pass
    vmem_limit = int(max(32 << 20, min((phys_vmem * 3) // 4, 2 * vmem_needed)))

    cost = pl.CostEstimate(
        flops=2 * N * K * E_pad,
        transcendentals=N,
        bytes_accessed=(N * K * in_bytes + K * E_pad * in_bytes
                        + 4 * E_pad * 4 + N * E * out_bytes),
    )

    kernel = functools.partial(_embed_ln_kernel, e_true=E)

    def _call(w_spec, c_spec):
        return pl.pallas_call(
            kernel,
            out_shape=jax.ShapeDtypeStruct((N, E), out_dtype),
            grid_spec=pl.GridSpec(
                grid=grid,
                in_specs=[
                    pl.BlockSpec((tm, K), lambda i: (i, 0)),   # patch rows
                    w_spec,                                     # (K, E_pad) weight
                    c_spec,                                     # (4, E_pad) consts
                ],
                out_specs=pl.BlockSpec((tm, E), lambda i: (i, 0)),
            ),
            compiler_params=pltpu.CompilerParams(
                dimension_semantics=("parallel",),
                vmem_limit_bytes=vmem_limit,
            ),
            cost_estimate=cost,
        )(patches2d, w_mat, consts)

    try:
        # Constant-index operands: single-buffer them (saves K*E_pad*in_bytes of
        # VMEM -- matters inside v7x's 64 MiB budget; harmless on v5e/v6e).
        out = _call(
            pl.BlockSpec((K, E_pad), lambda i: (0, 0), pipeline_mode=pl.Buffered(1)),
            pl.BlockSpec((4, E_pad), lambda i: (0, 0), pipeline_mode=pl.Buffered(1)),
        )
    except Exception:
        out = _call(pl.BlockSpec((K, E_pad), lambda i: (0, 0)),
                    pl.BlockSpec((4, E_pad), lambda i: (0, 0)))

    return out.reshape(B, L, E), Ho, Wo


def _reference(x, conv_w, conv_b, ln_w, ln_b, *, stride):
    """Pure-JAX f32 reference (conv + flatten + LayerNorm)."""
    pad_h, pad_w = conv_w.shape[2] // 2, conv_w.shape[3] // 2
    y = jax.lax.conv_general_dilated(
        x, conv_w, window_strides=(stride, stride),
        padding=((pad_h, pad_h), (pad_w, pad_w)),
        dimension_numbers=("NCHW", "OIHW", "NCHW"),
    ) + conv_b[None, :, None, None]
    B, E, Ho, Wo = y.shape
    y = y.reshape(B, E, Ho * Wo).transpose(0, 2, 1)            # (B, L, E)
    mu = jnp.mean(y, axis=-1, keepdims=True)
    var = jnp.mean((y - mu) ** 2, axis=-1, keepdims=True)
    yn = (y - mu) * jax.lax.rsqrt(var + LN_EPS)
    return yn * ln_w + ln_b, Ho, Wo


if __name__ == "__main__":
    # Small, module-consistent shapes: patch_size=7, stride=4, padding=3.
    B, C, H, W = 2, 4, 16, 16
    E, kh, kw, stride = 32, 7, 7, 4

    key = jax.random.PRNGKey(0)
    k_x, k_w, k_b, k_g, k_be = jax.random.split(key, 5)
    x = jax.random.normal(k_x, (B, C, H, W), dtype=jnp.float32)

    # Deterministic init mirroring OverlapPatchEmbed._init_weights.
    fan_out = kh * kw * E
    conv_w = jax.random.normal(k_w, (E, C, kh, kw), dtype=jnp.float32) * math.sqrt(2.0 / fan_out)
    conv_b = jnp.zeros((E,), jnp.float32)
    ln_w = jnp.ones((E,), jnp.float32)
    ln_b = jnp.zeros((E,), jnp.float32)

    ref, Ho_r, Wo_r = _reference(x, conv_w, conv_b, ln_w, ln_b, stride=stride)

    # f32 path: tight check of kernel structure / LN semantics.
    out_f32, Ho, Wo = overlap_patch_embed(
        x, conv_w, conv_b, ln_w, ln_b, stride=stride, compute_dtype=jnp.float32)
    out_f32 = jax.block_until_ready(out_f32)
    assert (Ho, Wo) == (Ho_r, Wo_r)
    assert out_f32.shape == (B, Ho * Wo, E)
    assert jnp.allclose(out_f32, ref, atol=1e-4, rtol=1e-4)

    # Non-trivial bias / gamma / beta (exercises the consts operand + pad-lane
    # mask) and a row tile that does NOT divide N (exercises cdiv edge blocks).
    conv_b2 = 0.1 * jax.random.normal(k_b, (E,), jnp.float32)
    ln_w2 = 1.0 + 0.1 * jax.random.normal(k_g, (E,), jnp.float32)
    ln_b2 = 0.1 * jax.random.normal(k_be, (E,), jnp.float32)
    ref2, _, _ = _reference(x, conv_w, conv_b2, ln_w2, ln_b2, stride=stride)
    out2, _, _ = overlap_patch_embed(
        x, conv_w, conv_b2, ln_w2, ln_b2, stride=stride,
        row_tile=24, compute_dtype=jnp.float32)
    out2 = jax.block_until_ready(out2)
    assert jnp.allclose(out2, ref2, atol=1e-4, rtol=1e-4)

    # bf16 fast path (default): bf16 im2col / matmul / output, f32 accumulate + LN.
    out_bf16, Ho_b, Wo_b = overlap_patch_embed(
        x, conv_w, conv_b2, ln_w2, ln_b2, stride=stride)
    out_bf16 = jax.block_until_ready(out_bf16)
    assert (Ho_b, Wo_b) == (Ho_r, Wo_r)
    assert out_bf16.shape == (B, Ho * Wo, E)
    assert out_bf16.dtype == jnp.bfloat16
    assert jnp.allclose(out_bf16.astype(jnp.float32), ref2, atol=5e-2, rtol=5e-2)

    print("KERNEL_OK")
</pallas_src>

<mosaic_0001>
module attributes {stable_mosaic.version = 11 : i64} {
  func.func @_embed_ln_kernel(%arg0: i32, %arg1: memref<32x196xf32, #tpu.memory_space<vmem>>, %arg2: memref<196x128xf32, #tpu.memory_space<vmem>>, %arg3: memref<4x128xf32, #tpu.memory_space<vmem>>, %arg4: memref<32x32xf32, #tpu.memory_space<vmem>>) attributes {dimension_semantics = [#tpu.dimension_semantics<parallel>], iteration_bounds = array<i64: 1>, scalar_prefetch = 0 : i64, scratch_operands = 0 : i64, tpu.core_type = #tpu.core_type<tc>, window_params = [{transform_indices = @transform_0, window_bounds = array<i64: 32, 196>}, {pipeline_mode = #tpu.pipeline_mode<synchronous>, transform_indices = @transform_1, window_bounds = array<i64: 196, 128>}, {pipeline_mode = #tpu.pipeline_mode<synchronous>, transform_indices = @transform_2, window_bounds = array<i64: 4, 128>}, {transform_indices = @transform_3, window_bounds = array<i64: 32, 32>}]} {
    %c0 = arith.constant 0 : index
    %c0_0 = arith.constant 0 : index
    %0 = vector.load %arg1[%c0, %c0_0] : memref<32x196xf32, #tpu.memory_space<vmem>>, vector<32x196xf32>
    %c0_1 = arith.constant 0 : index
    %c0_2 = arith.constant 0 : index
    %1 = vector.load %arg2[%c0_1, %c0_2] : memref<196x128xf32, #tpu.memory_space<vmem>>, vector<196x128xf32>
    %cst = arith.constant dense<0.000000e+00> : vector<32x128xf32>
    %2 = tpu.matmul %0, %1, %cst {dimension_numbers = #tpu.dot_dimension_numbers<[1], [0], [0], [1], [0, 0, 1, 1], [], []>} : vector<32x196xf32>, vector<196x128xf32>, vector<32x128xf32> -> vector<32x128xf32>
    %c0_3 = arith.constant 0 : index
    %c0_4 = arith.constant 0 : index
    %3 = vector.load %arg3[%c0_3, %c0_4] : memref<4x128xf32, #tpu.memory_space<vmem>>, vector<1x128xf32>
    %c1 = arith.constant 1 : index
    %c0_5 = arith.constant 0 : index
    %4 = vector.load %arg3[%c1, %c0_5] : memref<4x128xf32, #tpu.memory_space<vmem>>, vector<1x128xf32>
    %c2 = arith.constant 2 : index
    %c0_6 = arith.constant 0 : index
    %5 = vector.load %arg3[%c2, %c0_6] : memref<4x128xf32, #tpu.memory_space<vmem>>, vector<1x128xf32>
    %c3 = arith.constant 3 : index
    %c0_7 = arith.constant 0 : index
    %6 = vector.load %arg3[%c3, %c0_7] : memref<4x128xf32, #tpu.memory_space<vmem>>, vector<1x128xf32>
    %7 = vector.broadcast %3 : vector<1x128xf32> to vector<32x128xf32>
    %8 = arith.addf %2, %7 : vector<32x128xf32>
    %9 = vector.broadcast %6 : vector<1x128xf32> to vector<32x128xf32>
    %10 = arith.mulf %8, %9 : vector<32x128xf32>
    %cst_8 = arith.constant dense<0.000000e+00> : vector<32xf32>
    %11 = vector.multi_reduction <add>, %10, %cst_8 [1] : vector<32x128xf32> to vector<32xf32>
    %12 = vector.shape_cast %11 : vector<32xf32> to vector<32x1xf32>
    %cst_9 = arith.constant 3.125000e-02 : f32
    %13 = vector.broadcast %cst_9 : f32 to vector<32x1xf32>
    %14 = arith.mulf %12, %13 : vector<32x1xf32>
    %15 = vector.broadcast %14 : vector<32x1xf32> to vector<32x128xf32>
    %16 = arith.subf %8, %15 : vector<32x128xf32>
    %17 = vector.broadcast %6 : vector<1x128xf32> to vector<32x128xf32>
    %18 = arith.mulf %16, %17 : vector<32x128xf32>
    %19 = arith.mulf %18, %18 : vector<32x128xf32>
    %cst_10 = arith.constant dense<0.000000e+00> : vector<32xf32>
    %20 = vector.multi_reduction <add>, %19, %cst_10 [1] : vector<32x128xf32> to vector<32xf32>
    %21 = vector.shape_cast %20 : vector<32xf32> to vector<32x1xf32>
    %cst_11 = arith.constant 3.125000e-02 : f32
    %22 = vector.broadcast %cst_11 : f32 to vector<32x1xf32>
    %23 = arith.mulf %21, %22 : vector<32x1xf32>
    %cst_12 = arith.constant 9.99999974E-6 : f32
    %24 = vector.broadcast %cst_12 : f32 to vector<32x1xf32>
    %25 = arith.addf %23, %24 : vector<32x1xf32>
    %26 = math.rsqrt %25 : vector<32x1xf32>
    %27 = vector.broadcast %26 : vector<32x1xf32> to vector<32x128xf32>
    %28 = arith.mulf %16, %27 : vector<32x128xf32>
    %29 = vector.broadcast %4 : vector<1x128xf32> to vector<32x128xf32>
    %30 = arith.mulf %28, %29 : vector<32x128xf32>
    %31 = vector.broadcast %5 : vector<1x128xf32> to vector<32x128xf32>
    %32 = arith.addf %30, %31 : vector<32x128xf32>
    %33 = vector.extract_strided_slice %32 {offsets = [0, 0], sizes = [32, 32], strides = [1, 1]} : vector<32x128xf32> to vector<32x32xf32>
    %c0_13 = arith.constant 0 : index
    %c0_14 = arith.constant 0 : index
    %34 = vector.load %arg4[%c0_13, %c0_14] : memref<32x32xf32, #tpu.memory_space<vmem>>, vector<32x32xf32>
    tpu.vector_store %arg4[%c0_13, %c0_14], %33 {strides = array<i32>} : memref<32x32xf32, #tpu.memory_space<vmem>>, vector<32x32xf32>,
    return
  }
  func.func @transform_0(%arg0: i32) -> (i32, i32) {
    %c0_i32 = arith.constant 0 : i32
    %c0_i32_0 = arith.constant 0 : i32
    return %arg0, %c0_i32 : i32, i32
  }
  func.func @transform_1(%arg0: i32) -> (i32, i32) {
    %c0_i32 = arith.constant 0 : i32
    %c0_i32_0 = arith.constant 0 : i32
    %c0_i32_1 = arith.constant 0 : i32
    return %c0_i32, %c0_i32_0 : i32, i32
  }
  func.func @transform_2(%arg0: i32) -> (i32, i32) {
    %c0_i32 = arith.constant 0 : i32
    %c0_i32_0 = arith.constant 0 : i32
    %c0_i32_1 = arith.constant 0 : i32
    return %c0_i32, %c0_i32_0 : i32, i32
  }
  func.func @transform_3(%arg0: i32) -> (i32, i32) {
    %c0_i32 = arith.constant 0 : i32
    %c0_i32_0 = arith.constant 0 : i32
    return %arg0, %c0_i32 : i32, i32
  }
}

module attributes {stable_mosaic.version = 11 : i64} {
  func.func @_embed_ln_kernel(%arg0: i32, %arg1: memref<32x196xf32, #tpu.memory_space<vmem>>, %arg2: memref<196x128xf32, #tpu.memory_space<vmem>>, %arg3: memref<4x128xf32, #tpu.memory_space<vmem>>, %arg4: memref<32x32xf32, #tpu.memory_space<vmem>>) attributes {dimension_semantics = [#tpu.dimension_semantics<parallel>], iteration_bounds = array<i64: 1>, scalar_prefetch = 0 : i64, scratch_operands = 0 : i64, tpu.core_type = #tpu.core_type<tc>, window_params = [{transform_indices = @transform_0, window_bounds = array<i64: 32, 196>}, {pipeline_mode = #tpu.pipeline_mode<synchronous>, transform_indices = @transform_1, window_bounds = array<i64: 196, 128>}, {pipeline_mode = #tpu.pipeline_mode<synchronous>, transform_indices = @transform_2, window_bounds = array<i64: 4, 128>}, {transform_indices = @transform_3, window_bounds = array<i64: 32, 32>}]} {
    %c0 = arith.constant 0 : index
    %c0_0 = arith.constant 0 : index
    %0 = vector.load %arg1[%c0, %c0_0] : memref<32x196xf32, #tpu.memory_space<vmem>>, vector<32x196xf32>
    %c0_1 = arith.constant 0 : index
    %c0_2 = arith.constant 0 : index
    %1 = vector.load %arg2[%c0_1, %c0_2] : memref<196x128xf32, #tpu.memory_space<vmem>>, vector<196x128xf32>
    %cst = arith.constant dense<0.000000e+00> : vector<32x128xf32>
    %2 = tpu.matmul %0, %1, %cst {dimension_numbers = #tpu.dot_dimension_numbers<[1], [0], [0], [1], [0, 0, 1, 1], [], []>} : vector<32x196xf32>, vector<196x128xf32>, vector<32x128xf32> -> vector<32x128xf32>
    %c0_3 = arith.constant 0 : index
    %c0_4 = arith.constant 0 : index
    %3 = vector.load %arg3[%c0_3, %c0_4] : memref<4x128xf32, #tpu.memory_space<vmem>>, vector<1x128xf32>
    %c1 = arith.constant 1 : index
    %c0_5 = arith.constant 0 : index
    %4 = vector.load %arg3[%c1, %c0_5] : memref<4x128xf32, #tpu.memory_space<vmem>>, vector<1x128xf32>
    %c2 = arith.constant 2 : index
    %c0_6 = arith.constant 0 : index
    %5 = vector.load %arg3[%c2, %c0_6] : memref<4x128xf32, #tpu.memory_space<vmem>>, vector<1x128xf32>
    %c3 = arith.constant 3 : index
    %c0_7 = arith.constant 0 : index
    %6 = vector.load %arg3[%c3, %c0_7] : memref<4x128xf32, #tpu.memory_space<vmem>>, vector<1x128xf32>
    %7 = vector.broadcast %3 : vector<1x128xf32> to vector<32x128xf32>
    %8 = arith.addf %2, %7 : vector<32x128xf32>
    %9 = vector.broadcast %6 : vector<1x128xf32> to vector<32x128xf32>
    %10 = arith.mulf %8, %9 : vector<32x128xf32>
    %cst_8 = arith.constant dense<0.000000e+00> : vector<32xf32>
    %11 = vector.multi_reduction <add>, %10, %cst_8 [1] : vector<32x128xf32> to vector<32xf32>
    %12 = vector.shape_cast %11 : vector<32xf32> to vector<32x1xf32>
    %cst_9 = arith.constant 3.125000e-02 : f32
    %13 = vector.broadcast %cst_9 : f32 to vector<32x1xf32>
    %14 = arith.mulf %12, %13 : vector<32x1xf32>
    %15 = vector.broadcast %14 : vector<32x1xf32> to vector<32x128xf32>
    %16 = arith.subf %8, %15 : vector<32x128xf32>
    %17 = vector.broadcast %6 : vector<1x128xf32> to vector<32x128xf32>
    %18 = arith.mulf %16, %17 : vector<32x128xf32>
    %19 = arith.mulf %18, %18 : vector<32x128xf32>
    %cst_10 = arith.constant dense<0.000000e+00> : vector<32xf32>
    %20 = vector.multi_reduction <add>, %19, %cst_10 [1] : vector<32x128xf32> to vector<32xf32>
    %21 = vector.shape_cast %20 : vector<32xf32> to vector<32x1xf32>
    %cst_11 = arith.constant 3.125000e-02 : f32
    %22 = vector.broadcast %cst_11 : f32 to vector<32x1xf32>
    %23 = arith.mulf %21, %22 : vector<32x1xf32>
    %cst_12 = arith.constant 9.99999974E-6 : f32
    %24 = vector.broadcast %cst_12 : f32 to vector<32x1xf32>
    %25 = arith.addf %23, %24 : vector<32x1xf32>
    %26 = math.rsqrt %25 : vector<32x1xf32>
    %27 = vector.broadcast %26 : vector<32x1xf32> to vector<32x128xf32>
    %28 = arith.mulf %16, %27 : vector<32x128xf32>
    %29 = vector.broadcast %4 : vector<1x128xf32> to vector<32x128xf32>
    %30 = arith.mulf %28, %29 : vector<32x128xf32>
    %31 = vector.broadcast %5 : vector<1x128xf32> to vector<32x128xf32>
    %32 = arith.addf %30, %31 : vector<32x128xf32>
    %33 = vector.extract_strided_slice %32 {offsets = [0, 0], sizes = [32, 32], strides = [1, 1]} : vector<32x128xf32> to vector<32x32xf32>
    %c0_13 = arith.constant 0 : index
    %c0_14 = arith.constant 0 : index
    %34 = vector.load %arg4[%c0_13, %c0_14] : memref<32x32xf32, #tpu.memory_space<vmem>>, vector<32x32xf32>
    tpu.vector_store %arg4[%c0_13, %c0_14], %33 {strides = array<i32>} : memref<32x32xf32, #tpu.memory_space<vmem>>, vector<32x32xf32>,
    return
  }
  func.func @transform_0(%arg0: i32) -> (i32, i32) {
    %c0_i32 = arith.constant 0 : i32
    %c0_i32_0 = arith.constant 0 : i32
    return %arg0, %c0_i32 : i32, i32
  }
  func.func @transform_1(%arg0: i32) -> (i32, i32) {
    %c0_i32 = arith.constant 0 : i32
    %c0_i32_0 = arith.constant 0 : i32
    %c0_i32_1 = arith.constant 0 : i32
    return %c0_i32, %c0_i32_0 : i32, i32
  }
  func.func @transform_2(%arg0: i32) -> (i32, i32) {
    %c0_i32 = arith.constant 0 : i32
    %c0_i32_0 = arith.constant 0 : i32
    %c0_i32_1 = arith.constant 0 : i32
    return %c0_i32, %c0_i32_0 : i32, i32
  }
  func.func @transform_3(%arg0: i32) -> (i32, i32) {
    %c0_i32 = arith.constant 0 : i32
    %c0_i32_0 = arith.constant 0 : i32
    return %arg0, %c0_i32 : i32, i32
  }
}

</mosaic_0001>

<bundles_post_ra>
// kernel: tpu_custom_call.1
= control target key start
LH: loop header
LB: loop body
LE: loop exit
PB: predicated region body
PF: predicated region fallthrough
CT: control target
= control target key end

     0   :  { %8 = vsyncpa [#allocation3], 0  ;;  %s555_s0 = inlined_call_operand.hbm [shape: f32[32,196], index: 0, kind: input, shape index: {}]   ;;  %s556_s1 = inlined_call_operand.hbm [shape: f32[196,128], index: 1, kind: input, shape index: {}]   ;;  %s557_s2 = inlined_call_operand.hbm [shape: f32[4,128], index: 2, kind: input, shape index: {}]   ;;  %s558_s3 = inlined_call_operand.hbm [shape: f32[32,32], index: 3, kind: output, shape index: {}]  }
   0x1   :  { %9 = vsyncpa [#allocation6], 0 }
   0x2   :  { %10 = vsyncpa [#allocation4], 0  ;;  %s454_s12 = smov [#allocation5]  }
   0x3   :  { %s28_s13 = sshll.u32 %s454_s12, 4  ;;  %s29_s13 = int_to_ptr.vmem [resolvable:$true] %s28_s13 }
   0x4   :  { %s376_s14 = scalar_lea.vmem %s29_s13, 3200  ;;  %p381_p1 = scmp.lt.s32.totalorder %s29_s13, %s29_s13 }
   0x5   :  { %p377_p0 = scmp.ne.s32.totalorder %s29_s13, %s376_s14  ;;  %p382_p2 = scmp.lt.s32.totalorder %s376_s14, %s376_s14 }
   0x7   :  { %p383_p3 = por %p382_p2, %p381_p1 }
   0x9   :  { %p384_p4 = pnand %p383_p3, %p377_p0 }
   0xb   :  { %387 = shalt.err (!%p384_p4)
}
   0xc   :  { %s455_s15 = smov 128   ;;  %s456_s16 = smov 8  }
   0xd   :  { %34 = dma.hbm_to_vmem [thread:$0]  %s556_s1, 3200, %s29_s13, [#allocation6], %s455_s15, %s455_s15, %s456_s16  }
   0xe   :  { %s457_s19 = smov [#allocation2]  }
   0xf   :  { %s16_s20 = sshll.u32 %s457_s19, 4  ;;  %s17_s20 = int_to_ptr.vmem [resolvable:$true] %s16_s20 }
  0x10   :  { %s396_s21 = scalar_lea.vmem %s17_s20, 1024  ;;  %p401_p6 = scmp.lt.s32.totalorder %s17_s20, %s17_s20 }
  0x11   :  { %p397_p5 = scmp.ne.s32.totalorder %s17_s20, %s396_s21  ;;  %p402_p7 = scmp.lt.s32.totalorder %s396_s21, %s396_s21 }
  0x13   :  { %p403_p8 = por %p402_p7, %p401_p6 }
  0x15   :  { %p404_p9 = pnand %p403_p8, %p397_p5 }
  0x17   :  { %407 = shalt.err (!%p404_p9)
}
  0x18   :  { %s458_s22 = smov 256   ;;  %s459_s23 = smov 16  }
  0x19   :  { %22 = dma.hbm_to_vmem [thread:$0]  %s555_s0, 1024, %s17_s20, [#allocation3], %s458_s22, %s458_s22, %s459_s23  }
  0x1a   :  { %s460_s26 = smov [#allocation7]  }
  0x1b   :  { %s41_s27 = sshll.u32 %s460_s26, 4  ;;  %s42_s27 = int_to_ptr.vmem [resolvable:$true] %s41_s27 }
  0x1c   :  { %s416_s1 = scalar_lea.vmem %s42_s27, 64  ;;  %p421_p11 = scmp.lt.s32.totalorder %s42_s27, %s42_s27 }
  0x1d   :  { %p417_p10 = scmp.ne.s32.totalorder %s42_s27, %s416_s1  ;;  %p422_p12 = scmp.lt.s32.totalorder %s416_s1, %s416_s1 }
  0x1f   :  { %p423_p13 = por %p422_p12, %p421_p11 }
  0x21   :  { %p424_p0 = pnand %p423_p13, %p417_p10 }
  0x23   :  { %427 = shalt.err (!%p424_p0)
}
  0x24   :  { %44 = dma.hbm_to_vmem [thread:$0]  %s557_s2, 64, %s42_s27, [#allocation6]  }
  0x25   :  { %448 = dma.done.wait [#allocation3], 1024  }
  0x26   :  { %449 = vsyncadd [#allocation3], 4294966272 }
  0x27   :  { %450 = dma.done.wait [#allocation6], 3264  }
  0x28   :  { %451 = vsyncadd [#allocation6], 4294964032  ;;  %v461_v0 = vmov 0.0   ;;  %v77_v1 = vld [vmem:[#allocation5 + $0x78] sm:$0xff]  ;;  %v76_v2 = vld [vmem:[#allocation5 + $0x70] sm:$0xff]  ;;  %vm108_vm0 = vcmask 1043456  }
  0x29   :  { %112 = vmatprep.subr.mxu0 %v461_v0  ;;  %301 = vmatprep.subr.mxu1 %v461_v0  ;;  %v75_v3 = vld [vmem:[#allocation5 + $0x68] sm:$0xff]  ;;  %v74_v4 = vld [vmem:[#allocation5 + $0x60] sm:$0xff]  ;;  %v73_v5 = vld [vmem:[#allocation5 + $0x58] sm:$0xff]  ;;  %vm95_vm1 = vcmask 556032   ;;  %vm269_vm2 = vcmask 261120   ;;  %s462_s0 = smov [#allocation8]  }
  0x2a   :  { %113 = vmatpush1.msra.mxu0 %v77_v1  ;;  %326 = vmatpush1.msra.mxu1 %v77_v1  ;;  %v72_v6 = vld [vmem:[#allocation5 + $0x50] sm:$0xff]  ;;  %v71_v7 = vld [vmem:[#allocation5 + $0x48] sm:$0xff]  ;;  %v70_v8 = vld [vmem:[#allocation5 + $0x40] sm:$0xff]  ;;  %s279_s2 = sshll.u32 %s462_s0, 4  ;;  %s280_s2 = int_to_ptr.vmem [resolvable:$true] %s279_s2 }
  0x2b   :  { %114 = vmatprep.subr.mxu0 %v461_v0  ;;  %302 = vmatprep.subr.mxu1 %v461_v0  ;;  %v69_v9 = vld [vmem:[#allocation5 + $0x38] sm:$0xff]  ;;  %v68_v10 = vld [vmem:[#allocation5 + $0x30] sm:$0xff]  ;;  %v67_v11 = vld [vmem:[#allocation5 + $0x28] sm:$0xff]  ;;  %s428_s30 = scalar_lea.vmem %s280_s2, 512  ;;  %p433_p2 = scmp.lt.s32.totalorder %s280_s2, %s280_s2 }
  0x2c   :  { %115 = vmatpush1.msra.mxu0 %v76_v2  ;;  %327 = vmatpush1.msra.mxu1 %v76_v2  ;;  %v66_v12 = vld [vmem:[#allocation5 + $0x20] sm:$0xff]  ;;  %v65_v13 = vld [vmem:[#allocation5 + $0x18] sm:$0xff]  ;;  %v64_v14 = vld [vmem:[#allocation5 + $0x10] sm:$0xff]  ;;  %p429_p1 = scmp.ne.s32.totalorder %s280_s2, %s428_s30  ;;  %p434_p3 = scmp.lt.s32.totalorder %s428_s30, %s428_s30 }
  0x2d   :  { %116 = vmatprep.subr.mxu0 %v461_v0  ;;  %303 = vmatprep.subr.mxu1 %v461_v0  ;;  %v63_v15 = vld [vmem:[#allocation5 + $0x8] sm:$0xff]  ;;  %v62_v16 = vld [vmem:[#allocation5] sm:$0xff]  ;;  %v85_v18 = vld [vmem:[#allocation5 + $0xb8] sm:$0xff] }
  0x2e   :  { %117 = vmatpush1.msra.mxu0 %v75_v3  ;;  %328 = vmatpush1.msra.mxu1 %v75_v3  ;;  %v86_v17 = vld [vmem:[#allocation5 + $0xc0] sm:$0xf]  ;;  %v84_v19 = vld [vmem:[#allocation5 + $0xb0] sm:$0xff]  ;;  %v83_v20 = vld [vmem:[#allocation5 + $0xa8] sm:$0xff]  ;;  %p435_p4 = por %p434_p3, %p433_p2 }
  0x2f   :  { %118 = vmatprep.subr.mxu0 %v461_v0  ;;  %304 = vmatprep.subr.mxu1 %v461_v0  ;;  %v82_v21 = vld [vmem:[#allocation5 + $0xa0] sm:$0xff]  ;;  %v81_v22 = vld [vmem:[#allocation5 + $0x98] sm:$0xff]  ;;  %v80_v23 = vld [vmem:[#allocation5 + $0x90] sm:$0xff] }
  0x30   :  { %119 = vmatpush1.msra.mxu0 %v74_v4  ;;  %329 = vmatpush1.msra.mxu1 %v74_v4  ;;  %v79_v24 = vld [vmem:[#allocation5 + $0x88] sm:$0xff]  ;;  %v78_v25 = vld [vmem:[#allocation5 + $0x80] sm:$0xff]  ;;  %v57_v30 = vld [vmem:[#allocation2 + $0x18] sm:$0xff]  ;;  %p436_p5 = pnand %p435_p4, %p429_p1 }
  0x31   :  { %120 = vmatprep.subr.mxu0 %v461_v0  ;;  %305 = vmatprep.subr.mxu1 %v461_v0  ;;  %v55_v26 = vld [vmem:[#allocation2 + $0x8] sm:$0xff]  ;;  %v54_v28 = vld [vmem:[#allocation2] sm:$0xff]  ;;  %v61_v31 = vld [vmem:[#allocation2 + $0x38] sm:$0xff] }
  0x32   :  { %121 = vmatpush1.msra.mxu0 %v73_v5  ;;  %330 = vmatpush1.msra.mxu1 %v73_v5  ;;  %v59_v27 = vld [vmem:[#allocation2 + $0x28] sm:$0xff]  ;;  %v58_v29 = vld [vmem:[#allocation2 + $0x20] sm:$0xff]  ;;  %v56_v32 = vld [vmem:[#allocation2 + $0x10] sm:$0xff] }
  0x33   :  { %122 = vmatprep.subr.mxu0 %v461_v0  ;;  %306 = vmatprep.subr.mxu1 %v461_v0  ;;  %v60_v33 = vld [vmem:[#allocation2 + $0x30] sm:$0xff]  ;;  %v292_v34 = vld [vmem:[#allocation7] ss:$0 sm:$0xff]  ;;  %v298_v37 = vld [vmem:[#allocation7 + $0x3] ss:$0 sm:$0xff] }
  0x34   :  { %123 = vmatpush1.msra.mxu0 %v72_v6  ;;  %331 = vmatpush1.msra.mxu1 %v72_v6 }
  0x35   :  { %124 = vmatprep.subr.mxu0 %v461_v0  ;;  %307 = vmatprep.subr.mxu1 %v461_v0 }
  0x36   :  { %125 = vmatpush1.msra.mxu0 %v71_v7  ;;  %332 = vmatpush1.msra.mxu1 %v71_v7 }
  0x37   :  { %126 = vmatprep.subr.mxu0 %v461_v0  ;;  %308 = vmatprep.subr.mxu1 %v461_v0 }
  0x38   :  { %127 = vmatpush1.msra.mxu0 %v70_v8  ;;  %333 = vmatpush1.msra.mxu1 %v70_v8 }
  0x39   :  { %128 = vmatprep.subr.mxu0 %v461_v0  ;;  %309 = vmatprep.subr.mxu1 %v461_v0 }
  0x3a   :  { %129 = vmatpush1.msra.mxu0 %v69_v9  ;;  %334 = vmatpush1.msra.mxu1 %v69_v9 }
  0x3b   :  { %130 = vmatprep.subr.mxu0 %v461_v0  ;;  %310 = vmatprep.subr.mxu1 %v461_v0 }
  0x3c   :  { %131 = vmatpush1.msra.mxu0 %v68_v10  ;;  %335 = vmatpush1.msra.mxu1 %v68_v10 }
  0x3d   :  { %132 = vmatprep.subr.mxu0 %v461_v0  ;;  %311 = vmatprep.subr.mxu1 %v461_v0 }
  0x3e   :  { %133 = vmatpush1.msra.mxu0 %v67_v11  ;;  %336 = vmatpush1.msra.mxu1 %v67_v11 }
  0x3f   :  { %134 = vmatprep.subr.mxu0 %v461_v0  ;;  %312 = vmatprep.subr.mxu1 %v461_v0 }
  0x40   :  { %135 = vmatpush1.msra.mxu0 %v66_v12  ;;  %337 = vmatpush1.msra.mxu1 %v66_v12 }
  0x41   :  { %136 = vmatprep.subr.mxu0 %v461_v0  ;;  %313 = vmatprep.subr.mxu1 %v461_v0 }
  0x42   :  { %137 = vmatpush1.msra.mxu0 %v65_v13  ;;  %338 = vmatpush1.msra.mxu1 %v65_v13 }
  0x43   :  { %138 = vmatprep.subr.mxu0 %v461_v0  ;;  %314 = vmatprep.subr.mxu1 %v461_v0 }
  0x44   :  { %139 = vmatpush1.msra.mxu0 %v64_v14  ;;  %339 = vmatpush1.msra.mxu1 %v64_v14 }
  0x45   :  { %140 = vmatprep.subr.mxu0 %v461_v0  ;;  %315 = vmatprep.subr.mxu1 %v461_v0 }
  0x46   :  { %141 = vmatpush1.msra.mxu0 %v63_v15  ;;  %340 = vmatpush1.msra.mxu1 %v63_v15 }
  0x47   :  { %142 = vmatprep.subr.mxu0 %v461_v0  ;;  %316 = vmatprep.subr.mxu1 %v461_v0 }
  0x48   :  { %143 = vmatpush1.msra.mxu0 %v62_v16  ;;  %341 = vmatpush1.msra.mxu1 %v62_v16 }
  0x49   :  { %158 = vmatprep.subr.mxu0 %v461_v0  ;;  %317 = vmatprep.subr.mxu1 %v461_v0 }
  0x4a   :  { %293 = vmatpush2.msk.msra.mxu0 %vm108_vm0, %v86_v17  ;;  %342 = vmatpush2.msk.msra.mxu1 %vm108_vm0, %v86_v17 }
  0x4b   :  { %160 = vmatprep.subr.mxu0 %v461_v0  ;;  %318 = vmatprep.subr.mxu1 %v461_v0 }
  0x4c   :  { %161 = vmatpush2.msra.mxu0 %v85_v18  ;;  %343 = vmatpush2.msra.mxu1 %v85_v18 }
  0x4d   :  { %162 = vmatprep.subr.mxu0 %v461_v0  ;;  %319 = vmatprep.subr.mxu1 %v461_v0 }
  0x4e   :  { %163 = vmatpush2.msra.mxu0 %v84_v19  ;;  %344 = vmatpush2.msra.mxu1 %v84_v19 }
  0x4f   :  { %164 = vmatprep.subr.mxu0 %v461_v0  ;;  %320 = vmatprep.subr.mxu1 %v461_v0 }
  0x50   :  { %165 = vmatpush2.msra.mxu0 %v83_v20  ;;  %345 = vmatpush2.msra.mxu1 %v83_v20 }
  0x51   :  { %166 = vmatprep.subr.mxu0 %v461_v0  ;;  %321 = vmatprep.subr.mxu1 %v461_v0 }
  0x52   :  { %167 = vmatpush2.msra.mxu0 %v82_v21  ;;  %346 = vmatpush2.msra.mxu1 %v82_v21  ;;  %v299_v21 = vld [vmem:[#allocation7 + $0x1] ss:$0 sm:$0xff] }
  0x53   :  { %168 = vmatprep.subr.mxu0 %v461_v0  ;;  %322 = vmatprep.subr.mxu1 %v461_v0 }
  0x54   :  { %169 = vmatpush2.msra.mxu0 %v81_v22  ;;  %347 = vmatpush2.msra.mxu1 %v81_v22 }
  0x55   :  { %170 = vmatprep.subr.mxu0 %v461_v0  ;;  %323 = vmatprep.subr.mxu1 %v461_v0 }
  0x56   :  { %171 = vmatpush2.msra.mxu0 %v80_v23  ;;  %348 = vmatpush2.msra.mxu1 %v80_v23  ;;  %v300_v23 = vld [vmem:[#allocation7 + $0x2] ss:$0 sm:$0xff] }
  0x57   :  { %172 = vmatprep.subr.mxu0 %v461_v0  ;;  %324 = vmatprep.subr.mxu1 %v461_v0 }
  0x58   :  { %173 = vmatpush2.msra.mxu0 %v79_v24  ;;  %349 = vmatpush2.msra.mxu1 %v79_v24 }
  0x59   :  { %174 = vmatprep.subr.mxu0 %v461_v0  ;;  %325 = vmatprep.subr.mxu1 %v461_v0 }
  0x5a   :  { %175 = vmatpush2.msra.mxu0 %v78_v25  ;;  %350 = vmatpush2.msra.mxu1 %v78_v25 }
  0x5b   :  { %294 = vmatprep.mubr.msk.f32.mxu0 %vm95_vm1, %v55_v26  ;;  %296 = vmatprep.mubr.msk.f32.mxu1 %vm95_vm1, %v59_v27 }
  0x5c   :  { %177 = vmatmul.mubr.f32.vlgmr.msra.gmra.mxu0 %v54_v28  ;;  %187 = vmatmul.mubr.f32.vlgmr.msra.gmra.mxu1 %v58_v29 }
  0x5d   :  { %295 = vmatprep.mubr.msk.f32.mxu0 %vm95_vm1, %v57_v30  ;;  %297 = vmatprep.mubr.msk.f32.mxu1 %vm95_vm1, %v61_v31 }
  0x60   :  { %182 = vmatmul.mubr.f32.gmra.mxu0 %v56_v32  ;;  %192 = vmatmul.mubr.f32.gmra.mxu1 %v60_v33 }
 0x11c   :  { %v178_v35 = vpop.f32.mrf.mxu0  ;;  %v188_v36 = vpop.f32.mrf.mxu1 }
 0x11d   :  { %v179_v38 = vadd.f32 %v292_v34, %v178_v35  ;;  %v189_v39 = vadd.f32 %v292_v34, %v188_v36 }
 0x11e   :  { %v180_v40 = vpop.f32.mrf.mxu0  ;;  %v190_v41 = vpop.f32.mrf.mxu1 }
 0x11f   :  { %v203_v42 = vmul.f32 %v298_v37, %v189_v39  ;;  %v201_v43 = vmul.f32 %v298_v37, %v179_v38 }
 0x120   :  { %v183_v44 = vpop.f32.mrf.mxu0  ;;  %v193_v45 = vpop.f32.mrf.mxu1 }
 0x121   :  { %v184_v46 = vadd.f32 %v292_v34, %v183_v44  ;;  %v194_v47 = vadd.f32 %v292_v34, %v193_v45  ;;  %209 = vadd.xlane.f32.xlu1 %v203_v42  ;;  %205 = vadd.xlane.f32.xlu0 %v201_v43 }
 0x122   :  { %v185_v48 = vpop.f32.mrf.mxu0  ;;  %v195_v49 = vpop.f32.mrf.mxu1 }
 0x123   :  { %v204_v50 = vmul.f32 %v298_v37, %v194_v47  ;;  %v202_v51 = vmul.f32 %v298_v37, %v184_v46 }
 0x125   :  { %211 = vadd.xlane.f32.xlu1 %v204_v50  ;;  %207 = vadd.xlane.f32.xlu0 %v202_v51 }
 0x1aa   :  { %v210_v52 = vpop.xlane.xlu1 %209  ;;  %v206_v53 = vpop.xlane.xlu0 %205 }
 0x1ab   :  { %v215_v54 = vmul.f32 0.03125, %v210_v52  ;;  %v213_v55 = vmul.f32 0.03125, %v206_v53 }
 0x1ad   :  { %v219_v56 = vsub.f32 %v189_v39, %v215_v54  ;;  %v217_v57 = vsub.f32 %v179_v38, %v213_v55 }
 0x1ae   :  { %v212_v58 = vpop.xlane.xlu1 %211  ;;  %v208_v59 = vpop.xlane.xlu0 %207 }
 0x1af   :  { %v216_v60 = vmul.f32 0.03125, %v212_v58  ;;  %v214_v61 = vmul.f32 0.03125, %v208_v59  ;;  %v221_v62 = vmul.f32 %v298_v37, %v217_v57  ;;  %v223_v2 = vmul.f32 %v298_v37, %v219_v56 }
 0x1b1   :  { %v220_v63 = vsub.f32 %v194_v47, %v216_v60  ;;  %v218_v0 = vsub.f32 %v184_v46, %v214_v61  ;;  %v225_v1 = vmul.f32 %v221_v62, %v221_v62  ;;  %v227_v4 = vmul.f32 %v223_v2, %v223_v2 }
 0x1b3   :  { %229 = vadd.xlane.f32.xlu0 %v225_v1  ;;  %v222_v3 = vmul.f32 %v298_v37, %v218_v0  ;;  %v224_v6 = vmul.f32 %v298_v37, %v220_v63 }
 0x1b5   :  { %v226_v5 = vmul.f32 %v222_v3, %v222_v3  ;;  %v228_v7 = vmul.f32 %v224_v6, %v224_v6 }
 0x1b7   :  { %233 = vadd.xlane.f32.xlu0 %v227_v4  ;;  %231 = vadd.xlane.f32.xlu1 %v226_v5 }
 0x1bb   :  { %235 = vadd.xlane.f32.xlu1 %v228_v7 }
 0x23c   :  { %v230_v8 = vpop.xlane.xlu0 %229 }
 0x23d   :  { %v237_v9 = vmul.f32 0.03125, %v230_v8 }
 0x23f   :  { %v241_v10 = vadd.f32 1e-05, %v237_v9 }
 0x240   :  { %v232_v11 = vpop.xlane.xlu1 %231  ;;  %v234_v12 = vpop.xlane.xlu0 %233 }
 0x241   :  { %360 = vrsqrt.f32 %v241_v10  ;;  %v238_v13 = vmul.f32 0.03125, %v232_v11  ;;  %v239_v14 = vmul.f32 0.03125, %v234_v12 }
 0x243   :  { %v242_v15 = vadd.f32 1e-05, %v238_v13  ;;  %v243_v16 = vadd.f32 1e-05, %v239_v14 }
 0x244   :  { %v236_v17 = vpop.xlane.xlu1 %235 }
 0x245   :  { %362 = vrsqrt.f32 %v242_v15  ;;  %v240_v18 = vmul.f32 0.03125, %v236_v17 }
 0x246   :  { %364 = vrsqrt.f32 %v243_v16 }
 0x247   :  { %v244_v19 = vadd.f32 1e-05, %v240_v18 }
 0x249   :  { %366 = vrsqrt.f32 %v244_v19 }
 0x24e   :  { %v361_v20 = vpop.eup %360 }
 0x24f   :  { %v249_v22 = vmul.f32 %v361_v20, %v217_v57 }
 0x251   :  { %v257_v24 = vmul.f32 %v299_v21, %v249_v22 }
 0x252   :  { %v363_v25 = vpop.eup %362 }
 0x253   :  { %v365_v26 = vpop.eup %364  ;;  %v250_v27 = vmul.f32 %v363_v25, %v218_v0  ;;  %v265_v28 = vadd.f32 %v300_v23, %v257_v24 }
 0x254   :  { %v251_v29 = vmul.f32 %v365_v26, %v219_v56 }
 0x255   :  { %v258_v30 = vmul.f32 %v299_v21, %v250_v27  ;;  %270 = vst.msk [vmem:[#allocation8] sm:$0xff] %vm269_vm2, %v265_v28 }
 0x256   :  { %v367_v31 = vpop.eup %366  ;;  %v259_v32 = vmul.f32 %v299_v21, %v251_v29 }
 0x257   :  { %v252_v33 = vmul.f32 %v367_v31, %v220_v63  ;;  %v266_v34 = vadd.f32 %v300_v23, %v258_v30 }
 0x258   :  { %v267_v35 = vadd.f32 %v300_v23, %v259_v32 }
 0x259   :  { %v260_v36 = vmul.f32 %v299_v21, %v252_v33  ;;  %271 = vst.msk [vmem:[#allocation8 + $0x8] sm:$0xff] %vm269_vm2, %v266_v34 }
 0x25a   :  { %272 = vst.msk [vmem:[#allocation8 + $0x10] sm:$0xff] %vm269_vm2, %v267_v35 }
 0x25b   :  { %v268_v37 = vadd.f32 %v300_v23, %v260_v36 }
 0x25d   :  { %273 = vst.msk [vmem:[#allocation8 + $0x18] sm:$0xff] %vm269_vm2, %v268_v37 }
 0x25e   :  { %439 = shalt.err (!%p436_p5)
}
 0x25f   :  { %285 = dma.vmem_to_hbm [thread:$0]  %s280_s2, 512, %s558_s3, [#allocation4], %s455_s15, %s455_s15, %s456_s16  }
 0x260   :  { %452 = dma.done.wait [#allocation4], 512  }
 0x261   :  { %453 = vsyncadd [#allocation4], 4294966784 }
 0x262   :  { %289 = vsyncpa [#allocation3], 1 }
 0x263   :  { %290 = vsyncpa [#allocation6], 1 }
 0x264   :  { %291 = vsyncpa [#allocation4], 1 }

// kernel: tpu_custom_call.1
= control target key start
LH: loop header
LB: loop body
LE: loop exit
PB: predicated region body
PF: predicated region fallthrough
CT: control target
= control target key end

     0   :  { %8 = vsyncpa [#allocation3], 0  ;;  %s555_s0 = inlined_call_operand.hbm [shape: f32[32,196], index: 0, kind: input, shape index: {}]   ;;  %s556_s1 = inlined_call_operand.hbm [shape: f32[196,128], index: 1, kind: input, shape index: {}]   ;;  %s557_s2 = inlined_call_operand.hbm [shape: f32[4,128], index: 2, kind: input, shape index: {}]   ;;  %s558_s3 = inlined_call_operand.hbm [shape: f32[32,32], index: 3, kind: output, shape index: {}]  }
   0x1   :  { %9 = vsyncpa [#allocation6], 0 }
   0x2   :  { %10 = vsyncpa [#allocation4], 0  ;;  %s454_s12 = smov [#allocation5]  }
   0x3   :  { %s28_s13 = sshll.u32 %s454_s12, 4  ;;  %s29_s13 = int_to_ptr.vmem [resolvable:$true] %s28_s13 }
   0x4   :  { %s376_s14 = scalar_lea.vmem %s29_s13, 3200  ;;  %p381_p1 = scmp.lt.s32.totalorder %s29_s13, %s29_s13 }
   0x5   :  { %p377_p0 = scmp.ne.s32.totalorder %s29_s13, %s376_s14  ;;  %p382_p2 = scmp.lt.s32.totalorder %s376_s14, %s376_s14 }
   0x7   :  { %p383_p3 = por %p382_p2, %p381_p1 }
   0x9   :  { %p384_p4 = pnand %p383_p3, %p377_p0 }
   0xb   :  { %387 = shalt.err (!%p384_p4)
}
   0xc   :  { %s455_s15 = smov 128   ;;  %s456_s16 = smov 8  }
   0xd   :  { %34 = dma.hbm_to_vmem [thread:$0]  %s556_s1, 3200, %s29_s13, [#allocation6], %s455_s15, %s455_s15, %s456_s16  }
   0xe   :  { %s457_s19 = smov [#allocation2]  }
   0xf   :  { %s16_s20 = sshll.u32 %s457_s19, 4  ;;  %s17_s20 = int_to_ptr.vmem [resolvable:$true] %s16_s20 }
  0x10   :  { %s396_s21 = scalar_lea.vmem %s17_s20, 1024  ;;  %p401_p6 = scmp.lt.s32.totalorder %s17_s20, %s17_s20 }
  0x11   :  { %p397_p5 = scmp.ne.s32.totalorder %s17_s20, %s396_s21  ;;  %p402_p7 = scmp.lt.s32.totalorder %s396_s21, %s396_s21 }
  0x13   :  { %p403_p8 = por %p402_p7, %p401_p6 }
  0x15   :  { %p404_p9 = pnand %p403_p8, %p397_p5 }
  0x17   :  { %407 = shalt.err (!%p404_p9)
}
  0x18   :  { %s458_s22 = smov 256   ;;  %s459_s23 = smov 16  }
  0x19   :  { %22 = dma.hbm_to_vmem [thread:$0]  %s555_s0, 1024, %s17_s20, [#allocation3], %s458_s22, %s458_s22, %s459_s23  }
  0x1a   :  { %s460_s26 = smov [#allocation7]  }
  0x1b   :  { %s41_s27 = sshll.u32 %s460_s26, 4  ;;  %s42_s27 = int_to_ptr.vmem [resolvable:$true] %s41_s27 }
  0x1c   :  { %s416_s1 = scalar_lea.vmem %s42_s27, 64  ;;  %p421_p11 = scmp.lt.s32.totalorder %s42_s27, %s42_s27 }
  0x1d   :  { %p417_p10 = scmp.ne.s32.totalorder %s42_s27, %s416_s1  ;;  %p422_p12 = scmp.lt.s32.totalorder %s416_s1, %s416_s1 }
  0x1f   :  { %p423_p13 = por %p422_p12, %p421_p11 }
  0x21   :  { %p424_p0 = pnand %p423_p13, %p417_p10 }
  0x23   :  { %427 = shalt.err (!%p424_p0)
}
  0x24   :  { %44 = dma.hbm_to_vmem [thread:$0]  %s557_s2, 64, %s42_s27, [#allocation6]  }
  0x25   :  { %448 = dma.done.wait [#allocation3], 1024  }
  0x26   :  { %449 = vsyncadd [#allocation3], 4294966272 }
  0x27   :  { %450 = dma.done.wait [#allocation6], 3264  }
  0x28   :  { %451 = vsyncadd [#allocation6], 4294964032  ;;  %v461_v0 = vmov 0.0   ;;  %v77_v1 = vld [vmem:[#allocation5 + $0x78] sm:$0xff]  ;;  %v76_v2 = vld [vmem:[#allocation5 + $0x70] sm:$0xff]  ;;  %vm108_vm0 = vcmask 1043456  }
  0x29   :  { %112 = vmatprep.subr.mxu0 %v461_v0  ;;  %301 = vmatprep.subr.mxu1 %v461_v0  ;;  %v75_v3 = vld [vmem:[#allocation5 + $0x68] sm:$0xff]  ;;  %v74_v4 = vld [vmem:[#allocation5 + $0x60] sm:$0xff]  ;;  %v73_v5 = vld [vmem:[#allocation5 + $0x58] sm:$0xff]  ;;  %vm95_vm1 = vcmask 556032   ;;  %vm269_vm2 = vcmask 261120   ;;  %s462_s0 = smov [#allocation8]  }
  0x2a   :  { %113 = vmatpush1.msra.mxu0 %v77_v1  ;;  %326 = vmatpush1.msra.mxu1 %v77_v1  ;;  %v72_v6 = vld [vmem:[#allocation5 + $0x50] sm:$0xff]  ;;  %v71_v7 = vld [vmem:[#allocation5 + $0x48] sm:$0xff]  ;;  %v70_v8 = vld [vmem:[#allocation5 + $0x40] sm:$0xff]  ;;  %s279_s2 = sshll.u32 %s462_s0, 4  ;;  %s280_s2 = int_to_ptr.vmem [resolvable:$true] %s279_s2 }
  0x2b   :  { %114 = vmatprep.subr.mxu0 %v461_v0  ;;  %302 = vmatprep.subr.mxu1 %v461_v0  ;;  %v69_v9 = vld [vmem:[#allocation5 + $0x38] sm:$0xff]  ;;  %v68_v10 = vld [vmem:[#allocation5 + $0x30] sm:$0xff]  ;;  %v67_v11 = vld [vmem:[#allocation5 + $0x28] sm:$0xff]  ;;  %s428_s30 = scalar_lea.vmem %s280_s2, 512  ;;  %p433_p2 = scmp.lt.s32.totalorder %s280_s2, %s280_s2 }
  0x2c   :  { %115 = vmatpush1.msra.mxu0 %v76_v2  ;;  %327 = vmatpush1.msra.mxu1 %v76_v2  ;;  %v66_v12 = vld [vmem:[#allocation5 + $0x20] sm:$0xff]  ;;  %v65_v13 = vld [vmem:[#allocation5 + $0x18] sm:$0xff]  ;;  %v64_v14 = vld [vmem:[#allocation5 + $0x10] sm:$0xff]  ;;  %p429_p1 = scmp.ne.s32.totalorder %s280_s2, %s428_s30  ;;  %p434_p3 = scmp.lt.s32.totalorder %s428_s30, %s428_s30 }
  0x2d   :  { %116 = vmatprep.subr.mxu0 %v461_v0  ;;  %303 = vmatprep.subr.mxu1 %v461_v0  ;;  %v63_v15 = vld [vmem:[#allocation5 + $0x8] sm:$0xff]  ;;  %v62_v16 = vld [vmem:[#allocation5] sm:$0xff]  ;;  %v85_v18 = vld [vmem:[#allocation5 + $0xb8] sm:$0xff] }
  0x2e   :  { %117 = vmatpush1.msra.mxu0 %v75_v3  ;;  %328 = vmatpush1.msra.mxu1 %v75_v3  ;;  %v86_v17 = vld [vmem:[#allocation5 + $0xc0] sm:$0xf]  ;;  %v84_v19 = vld [vmem:[#allocation5 + $0xb0] sm:$0xff]  ;;  %v83_v20 = vld [vmem:[#allocation5 + $0xa8] sm:$0xff]  ;;  %p435_p4 = por %p434_p3, %p433_p2 }
  0x2f   :  { %118 = vmatprep.subr.mxu0 %v461_v0  ;;  %304 = vmatprep.subr.mxu1 %v461_v0  ;;  %v82_v21 = vld [vmem:[#allocation5 + $0xa0] sm:$0xff]  ;;  %v81_v22 = vld [vmem:[#allocation5 + $0x98] sm:$0xff]  ;;  %v80_v23 = vld [vmem:[#allocation5 + $0x90] sm:$0xff] }
  0x30   :  { %119 = vmatpush1.msra.mxu0 %v74_v4  ;;  %329 = vmatpush1.msra.mxu1 %v74_v4  ;;  %v79_v24 = vld [vmem:[#allocation5 + $0x88] sm:$0xff]  ;;  %v78_v25 = vld [vmem:[#allocation5 + $0x80] sm:$0xff]  ;;  %v57_v30 = vld [vmem:[#allocation2 + $0x18] sm:$0xff]  ;;  %p436_p5 = pnand %p435_p4, %p429_p1 }
  0x31   :  { %120 = vmatprep.subr.mxu0 %v461_v0  ;;  %305 = vmatprep.subr.mxu1 %v461_v0  ;;  %v55_v26 = vld [vmem:[#allocation2 + $0x8] sm:$0xff]  ;;  %v54_v28 = vld [vmem:[#allocation2] sm:$0xff]  ;;  %v61_v31 = vld [vmem:[#allocation2 + $0x38] sm:$0xff] }
  0x32   :  { %121 = vmatpush1.msra.mxu0 %v73_v5  ;;  %330 = vmatpush1.msra.mxu1 %v73_v5  ;;  %v59_v27 = vld [vmem:[#allocation2 + $0x28] sm:$0xff]  ;;  %v58_v29 = vld [vmem:[#allocation2 + $0x20] sm:$0xff]  ;;  %v56_v32 = vld [vmem:[#allocation2 + $0x10] sm:$0xff] }
  0x33   :  { %122 = vmatprep.subr.mxu0 %v461_v0  ;;  %306 = vmatprep.subr.mxu1 %v461_v0  ;;  %v60_v33 = vld [vmem:[#allocation2 + $0x30] sm:$0xff]  ;;  %v292_v34 = vld [vmem:[#allocation7] ss:$0 sm:$0xff]  ;;  %v298_v37 = vld [vmem:[#allocation7 + $0x3] ss:$0 sm:$0xff] }
  0x34   :  { %123 = vmatpush1.msra.mxu0 %v72_v6  ;;  %331 = vmatpush1.msra.mxu1 %v72_v6 }
  0x35   :  { %124 = vmatprep.subr.mxu0 %v461_v0  ;;  %307 = vmatprep.subr.mxu1 %v461_v0 }
  0x36   :  { %125 = vmatpush1.msra.mxu0 %v71_v7  ;;  %332 = vmatpush1.msra.mxu1 %v71_v7 }
  0x37   :  { %126 = vmatprep.subr.mxu0 %v461_v0  ;;  %308 = vmatprep.subr.mxu1 %v461_v0 }
  0x38   :  { %127 = vmatpush1.msra.mxu0 %v70_v8  ;;  %333 = vmatpush1.msra.mxu1 %v70_v8 }
  0x39   :  { %128 = vmatprep.subr.mxu0 %v461_v0  ;;  %309 = vmatprep.subr.mxu1 %v461_v0 }
  0x3a   :  { %129 = vmatpush1.msra.mxu0 %v69_v9  ;;  %334 = vmatpush1.msra.mxu1 %v69_v9 }
  0x3b   :  { %130 = vmatprep.subr.mxu0 %v461_v0  ;;  %310 = vmatprep.subr.mxu1 %v461_v0 }
  0x3c   :  { %131 = vmatpush1.msra.mxu0 %v68_v10  ;;  %335 = vmatpush1.msra.mxu1 %v68_v10 }
  0x3d   :  { %132 = vmatprep.subr.mxu0 %v461_v0  ;;  %311 = vmatprep.subr.mxu1 %v461_v0 }
  0x3e   :  { %133 = vmatpush1.msra.mxu0 %v67_v11  ;;  %336 = vmatpush1.msra.mxu1 %v67_v11 }
  0x3f   :  { %134 = vmatprep.subr.mxu0 %v461_v0  ;;  %312 = vmatprep.subr.mxu1 %v461_v0 }
  0x40   :  { %135 = vmatpush1.msra.mxu0 %v66_v12  ;;  %337 = vmatpush1.msra.mxu1 %v66_v12 }
  0x41   :  { %136 = vmatprep.subr.mxu0 %v461_v0  ;;  %313 = vmatprep.subr.mxu1 %v461_v0 }
  0x42   :  { %137 = vmatpush1.msra.mxu0 %v65_v13  ;;  %338 = vmatpush1.msra.mxu1 %v65_v13 }
  0x43   :  { %138 = vmatprep.subr.mxu0 %v461_v0  ;;  %314 = vmatprep.subr.mxu1 %v461_v0 }
  0x44   :  { %139 = vmatpush1.msra.mxu0 %v64_v14  ;;  %339 = vmatpush1.msra.mxu1 %v64_v14 }
  0x45   :  { %140 = vmatprep.subr.mxu0 %v461_v0  ;;  %315 = vmatprep.subr.mxu1 %v461_v0 }
  0x46   :  { %141 = vmatpush1.msra.mxu0 %v63_v15  ;;  %340 = vmatpush1.msra.mxu1 %v63_v15 }
  0x47   :  { %142 = vmatprep.subr.mxu0 %v461_v0  ;;  %316 = vmatprep.subr.mxu1 %v461_v0 }
  0x48   :  { %143 = vmatpush1.msra.mxu0 %v62_v16  ;;  %341 = vmatpush1.msra.mxu1 %v62_v16 }
  0x49   :  { %158 = vmatprep.subr.mxu0 %v461_v0  ;;  %317 = vmatprep.subr.mxu1 %v461_v0 }
  0x4a   :  { %293 = vmatpush2.msk.msra.mxu0 %vm108_vm0, %v86_v17  ;;  %342 = vmatpush2.msk.msra.mxu1 %vm108_vm0, %v86_v17 }
  0x4b   :  { %160 = vmatprep.subr.mxu0 %v461_v0  ;;  %318 = vmatprep.subr.mxu1 %v461_v0 }
  0x4c   :  { %161 = vmatpush2.msra.mxu0 %v85_v18  ;;  %343 = vmatpush2.msra.mxu1 %v85_v18 }
  0x4d   :  { %162 = vmatprep.subr.mxu0 %v461_v0  ;;  %319 = vmatprep.subr.mxu1 %v461_v0 }
  0x4e   :  { %163 = vmatpush2.msra.mxu0 %v84_v19  ;;  %344 = vmatpush2.msra.mxu1 %v84_v19 }
  0x4f   :  { %164 = vmatprep.subr.mxu0 %v461_v0  ;;  %320 = vmatprep.subr.mxu1 %v461_v0 }
  0x50   :  { %165 = vmatpush2.msra.mxu0 %v83_v20  ;;  %345 = vmatpush2.msra.mxu1 %v83_v20 }
  0x51   :  { %166 = vmatprep.subr.mxu0 %v461_v0  ;;  %321 = vmatprep.subr.mxu1 %v461_v0 }
  0x52   :  { %167 = vmatpush2.msra.mxu0 %v82_v21  ;;  %346 = vmatpush2.msra.mxu1 %v82_v21  ;;  %v299_v21 = vld [vmem:[#allocation7 + $0x1] ss:$0 sm:$0xff] }
  0x53   :  { %168 = vmatprep.subr.mxu0 %v461_v0  ;;  %322 = vmatprep.subr.mxu1 %v461_v0 }
  0x54   :  { %169 = vmatpush2.msra.mxu0 %v81_v22  ;;  %347 = vmatpush2.msra.mxu1 %v81_v22 }
  0x55   :  { %170 = vmatprep.subr.mxu0 %v461_v0  ;;  %323 = vmatprep.subr.mxu1 %v461_v0 }
  0x56   :  { %171 = vmatpush2.msra.mxu0 %v80_v23  ;;  %348 = vmatpush2.msra.mxu1 %v80_v23  ;;  %v300_v23 = vld [vmem:[#allocation7 + $0x2] ss:$0 sm:$0xff] }
  0x57   :  { %172 = vmatprep.subr.mxu0 %v461_v0  ;;  %324 = vmatprep.subr.mxu1 %v461_v0 }
  0x58   :  { %173 = vmatpush2.msra.mxu0 %v79_v24  ;;  %349 = vmatpush2.msra.mxu1 %v79_v24 }
  0x59   :  { %174 = vmatprep.subr.mxu0 %v461_v0  ;;  %325 = vmatprep.subr.mxu1 %v461_v0 }
  0x5a   :  { %175 = vmatpush2.msra.mxu0 %v78_v25  ;;  %350 = vmatpush2.msra.mxu1 %v78_v25 }
  0x5b   :  { %294 = vmatprep.mubr.msk.f32.mxu0 %vm95_vm1, %v55_v26  ;;  %296 = vmatprep.mubr.msk.f32.mxu1 %vm95_vm1, %v59_v27 }
  0x5c   :  { %177 = vmatmul.mubr.f32.vlgmr.msra.gmra.mxu0 %v54_v28  ;;  %187 = vmatmul.mubr.f32.vlgmr.msra.gmra.mxu1 %v58_v29 }
  0x5d   :  { %295 = vmatprep.mubr.msk.f32.mxu0 %vm95_vm1, %v57_v30  ;;  %297 = vmatprep.mubr.msk.f32.mxu1 %vm95_vm1, %v61_v31 }
  0x60   :  { %182 = vmatmul.mubr.f32.gmra.mxu0 %v56_v32  ;;  %192 = vmatmul.mubr.f32.gmra.mxu1 %v60_v33 }
 0x11c   :  { %v178_v35 = vpop.f32.mrf.mxu0  ;;  %v188_v36 = vpop.f32.mrf.mxu1 }
 0x11d   :  { %v179_v38 = vadd.f32 %v292_v34, %v178_v35  ;;  %v189_v39 = vadd.f32 %v292_v34, %v188_v36 }
 0x11e   :  { %v180_v40 = vpop.f32.mrf.mxu0  ;;  %v190_v41 = vpop.f32.mrf.mxu1 }
 0x11f   :  { %v203_v42 = vmul.f32 %v298_v37, %v189_v39  ;;  %v201_v43 = vmul.f32 %v298_v37, %v179_v38 }
 0x120   :  { %v183_v44 = vpop.f32.mrf.mxu0  ;;  %v193_v45 = vpop.f32.mrf.mxu1 }
 0x121   :  { %v184_v46 = vadd.f32 %v292_v34, %v183_v44  ;;  %v194_v47 = vadd.f32 %v292_v34, %v193_v45  ;;  %209 = vadd.xlane.f32.xlu1 %v203_v42  ;;  %205 = vadd.xlane.f32.xlu0 %v201_v43 }
 0x122   :  { %v185_v48 = vpop.f32.mrf.mxu0  ;;  %v195_v49 = vpop.f32.mrf.mxu1 }
 0x123   :  { %v204_v50 = vmul.f32 %v298_v37, %v194_v47  ;;  %v202_v51 = vmul.f32 %v298_v37, %v184_v46 }
 0x125   :  { %211 = vadd.xlane.f32.xlu1 %v204_v50  ;;  %207 = vadd.xlane.f32.xlu0 %v202_v51 }
 0x1aa   :  { %v210_v52 = vpop.xlane.xlu1 %209  ;;  %v206_v53 = vpop.xlane.xlu0 %205 }
 0x1ab   :  { %v215_v54 = vmul.f32 0.03125, %v210_v52  ;;  %v213_v55 = vmul.f32 0.03125, %v206_v53 }
 0x1ad   :  { %v219_v56 = vsub.f32 %v189_v39, %v215_v54  ;;  %v217_v57 = vsub.f32 %v179_v38, %v213_v55 }
 0x1ae   :  { %v212_v58 = vpop.xlane.xlu1 %211  ;;  %v208_v59 = vpop.xlane.xlu0 %207 }
 0x1af   :  { %v216_v60 = vmul.f32 0.03125, %v212_v58  ;;  %v214_v61 = vmul.f32 0.03125, %v208_v59  ;;  %v221_v62 = vmul.f32 %v298_v37, %v217_v57  ;;  %v223_v2 = vmul.f32 %v298_v37, %v219_v56 }
 0x1b1   :  { %v220_v63 = vsub.f32 %v194_v47, %v216_v60  ;;  %v218_v0 = vsub.f32 %v184_v46, %v214_v61  ;;  %v225_v1 = vmul.f32 %v221_v62, %v221_v62  ;;  %v227_v4 = vmul.f32 %v223_v2, %v223_v2 }
 0x1b3   :  { %229 = vadd.xlane.f32.xlu0 %v225_v1  ;;  %v222_v3 = vmul.f32 %v298_v37, %v218_v0  ;;  %v224_v6 = vmul.f32 %v298_v37, %v220_v63 }
 0x1b5   :  { %v226_v5 = vmul.f32 %v222_v3, %v222_v3  ;;  %v228_v7 = vmul.f32 %v224_v6, %v224_v6 }
 0x1b7   :  { %233 = vadd.xlane.f32.xlu0 %v227_v4  ;;  %231 = vadd.xlane.f32.xlu1 %v226_v5 }
 0x1bb   :  { %235 = vadd.xlane.f32.xlu1 %v228_v7 }
 0x23c   :  { %v230_v8 = vpop.xlane.xlu0 %229 }
 0x23d   :  { %v237_v9 = vmul.f32 0.03125, %v230_v8 }
 0x23f   :  { %v241_v10 = vadd.f32 1e-05, %v237_v9 }
 0x240   :  { %v232_v11 = vpop.xlane.xlu1 %231  ;;  %v234_v12 = vpop.xlane.xlu0 %233 }
 0x241   :  { %360 = vrsqrt.f32 %v241_v10  ;;  %v238_v13 = vmul.f32 0.03125, %v232_v11  ;;  %v239_v14 = vmul.f32 0.03125, %v234_v12 }
 0x243   :  { %v242_v15 = vadd.f32 1e-05, %v238_v13  ;;  %v243_v16 = vadd.f32 1e-05, %v239_v14 }
 0x244   :  { %v236_v17 = vpop.xlane.xlu1 %235 }
 0x245   :  { %362 = vrsqrt.f32 %v242_v15  ;;  %v240_v18 = vmul.f32 0.03125, %v236_v17 }
 0x246   :  { %364 = vrsqrt.f32 %v243_v16 }
 0x247   :  { %v244_v19 = vadd.f32 1e-05, %v240_v18 }
 0x249   :  { %366 = vrsqrt.f32 %v244_v19 }
 0x24e   :  { %v361_v20 = vpop.eup %360 }
 0x24f   :  { %v249_v22 = vmul.f32 %v361_v20, %v217_v57 }
 0x251   :  { %v257_v24 = vmul.f32 %v299_v21, %v249_v22 }
 0x252   :  { %v363_v25 = vpop.eup %362 }
 0x253   :  { %v365_v26 = vpop.eup %364  ;;  %v250_v27 = vmul.f32 %v363_v25, %v218_v0  ;;  %v265_v28 = vadd.f32 %v300_v23, %v257_v24 }
 0x254   :  { %v251_v29 = vmul.f32 %v365_v26, %v219_v56 }
 0x255   :  { %v258_v30 = vmul.f32 %v299_v21, %v250_v27  ;;  %270 = vst.msk [vmem:[#allocation8] sm:$0xff] %vm269_vm2, %v265_v28 }
 0x256   :  { %v367_v31 = vpop.eup %366  ;;  %v259_v32 = vmul.f32 %v299_v21, %v251_v29 }
 0x257   :  { %v252_v33 = vmul.f32 %v367_v31, %v220_v63  ;;  %v266_v34 = vadd.f32 %v300_v23, %v258_v30 }
 0x258   :  { %v267_v35 = vadd.f32 %v300_v23, %v259_v32 }
 0x259   :  { %v260_v36 = vmul.f32 %v299_v21, %v252_v33  ;;  %271 = vst.msk [vmem:[#allocation8 + $0x8] sm:$0xff] %vm269_vm2, %v266_v34 }
 0x25a   :  { %272 = vst.msk [vmem:[#allocation8 + $0x10] sm:$0xff] %vm269_vm2, %v267_v35 }
 0x25b   :  { %v268_v37 = vadd.f32 %v300_v23, %v260_v36 }
 0x25d   :  { %273 = vst.msk [vmem:[#allocation8 + $0x18] sm:$0xff] %vm269_vm2, %v268_v37 }
 0x25e   :  { %439 = shalt.err (!%p436_p5)
}
 0x25f   :  { %285 = dma.vmem_to_hbm [thread:$0]  %s280_s2, 512, %s558_s3, [#allocation4], %s455_s15, %s455_s15, %s456_s16  }
 0x260   :  { %452 = dma.done.wait [#allocation4], 512  }
 0x261   :  { %453 = vsyncadd [#allocation4], 4294966784 }
 0x262   :  { %289 = vsyncpa [#allocation3], 1 }
 0x263   :  { %290 = vsyncpa [#allocation6], 1 }
 0x264   :  { %291 = vsyncpa [#allocation4], 1 }

</bundles_post_ra>
